<compile_context>
chip_gen: v6e
topology: v6e:2x2x1
jax: 0.10.0
libtpu: 0.0.40
codegen_flags: <defaults>
</compile_context>

<pallas_src>
import functools

import jax
import jax.numpy as jnp
from jax.experimental import pallas as pl
from jax.experimental.pallas import tpu as pltpu


def _sdpa_kernel(*refs, scale, has_mask):
    """One grid step: G packed (batch*head) slices x one Lq tile, full Lk."""
    if has_mask:
        q_ref, k_ref, v_ref, m_ref, ctx_ref, attn_ref = refs
    else:
        q_ref, k_ref, v_ref, ctx_ref, attn_ref = refs

    q = q_ref[...]                      # (G, tq, D)
    k = k_ref[...]                      # (G, Lk, D)
    v = v_ref[...]                      # (G, Lk, Dv)

    # Fold the scalar scale into Q (Lq*D elems) instead of the (Lq, Lk) scores.
    if scale:                           # mirrors `if scale:` in the PyTorch code
        q = q * jnp.asarray(scale, dtype=q.dtype)

    # Q @ K^T contracted on D with a batch dim G -> no explicit K transpose.
    scores = jax.lax.dot_general(
        q, k,
        dimension_numbers=(((2,), (2,)), ((0,), (0,))),
        preferred_element_type=jnp.float32,
    )                                   # (G, tq, Lk) f32

    if has_mask:
        # Exact PyTorch arithmetic (valid for any mask values, not just 0/1).
        # The mask block may be (1, tq, Lk) for head-broadcast masks; jnp
        # broadcasting over the leading (non-tiled) dim handles it.
        m = m_ref[...].astype(jnp.float32)
        scores = scores * (jnp.float32(1.0) - m) + m * jnp.float32(-1000000.0)

    # Numerically stable softmax along Lk (matches nn.Softmax(dim=-1)).
    m_max = jnp.max(scores, axis=-1, keepdims=True)
    p = jnp.exp(scores - m_max)
    denom = jnp.sum(p, axis=-1, keepdims=True)
    # Exact reciprocal: denom is only (G, tq, 1), so this is cheap and keeps the
    # *returned* attention matrix faithful to an exact softmax.
    attn = p * (jnp.float32(1.0) / denom)

    # attn @ V, batched over G; feed the MXU in V's dtype.
    ctx = jax.lax.dot_general(
        attn.astype(v.dtype), v,
        dimension_numbers=(((2,), (1,)), ((0,), (0,))),
        preferred_element_type=jnp.float32,
    )                                   # (G, tq, Dv)

    attn_ref[...] = attn.astype(attn_ref.dtype)
    ctx_ref[...] = ctx.astype(ctx_ref.dtype)


def _vmem_budget():
    """(vmem_limit_bytes for CompilerParams, per-step tile budget) — chip aware."""
    try:
        info = pltpu.get_tpu_info()
        total = int(getattr(info, "vmem_capacity_bytes", 0)) or 64 * 1024 * 1024
    except Exception:
        total = 64 * 1024 * 1024        # conservative: v7x per-TC VMEM
    vmem_limit = min((total * 3) // 4, 96 * 1024 * 1024)
    step_budget = vmem_limit // 2
    return vmem_limit, step_budget


def _choose_tiles(BH, H, Lq, Lk, D, Dv, q_itemsize, attn_itemsize,
                  mask_itemsize, has_mask, mask_broadcast, budget_bytes):
    """Pick (heads-per-step G, query tile tq) under a per-step VMEM budget."""

    def step_bytes(G, tq):
        io = (G * tq * D * q_itemsize          # Q tile
              + G * Lk * D * q_itemsize        # K (resident across q tiles)
              + G * Lk * Dv * q_itemsize       # V
              + G * tq * Lk * attn_itemsize    # attn output tile
              + G * tq * Dv * q_itemsize)      # ctx output tile
        if has_mask:
            mg = 1 if mask_broadcast else G
            io += mg * tq * Lk * mask_itemsize
        # scores, p, attn (and the f32 mask temp) are simultaneously-live f32
        # (G, tq, Lk) buffers — count them all, not just one.
        n_tmp = 4 if has_mask else 3
        tmp = n_tmp * G * tq * Lk * 4
        return 2 * io + tmp              # x2: double-buffered pipeline tiles

    # Valid query tiles: full Lq, or divisors of Lq that respect the sublane
    # tile of the narrowest streamed dtype (8 for 32-bit, 32 for 8-bit masks).
    min_sub = 8
    if has_mask and mask_itemsize and mask_itemsize < 4:
        min_sub = max(min_sub, 32 // mask_itemsize)
    cands = [Lq] + [c for c in (2048, 1024, 512, 256, 128, 64, 32, 16, 8)
                    if c < Lq and Lq % c == 0 and c % min_sub == 0]
    tq = None
    for cand in cands:                   # largest-first: big, lane-dense tiles
        if step_bytes(1, cand) <= budget_bytes:
            tq = cand
            break
    if tq is None:
        tq = cands[-1]                   # best effort (may still spill for huge Lk)
    n_q = Lq // tq

    # Pack several (batch, head) slices per grid step when per-head tiles are
    # tiny (amortizes ~0.35us/step grid overhead), but keep >= 2 outer grid
    # steps so dual-TC chips shard the g axis and keep per-core K/V residency.
    G = 1
    if Lq <= 128 and Lk <= 512:
        for cand in (16, 8, 4, 2):
            if BH % cand != 0:
                continue
            if mask_broadcast and H % cand != 0:
                continue                 # groups must not straddle a batch boundary
            if step_bytes(cand, tq) > budget_bytes:
                continue
            if (BH // cand) * n_q >= 2 or BH * n_q < 2:
                G = cand
                break
    return G, tq


def scaled_dot_product_attention(Q, K, V, scale, mask=None, attn_dtype=None):
    """Pallas implementation of ScaledDotProductAttention.forward.

    Q: (B, H, Lq, D)   K: (B, H, Lk, D)   V: (B, H, Lk, Dv)
    mask: (B, H, Lq, Lk) or (B, 1, Lq, Lk), any dtype; semantics are the exact
          PyTorch form  scores*(1-mask) + mask*(-1e6)  (or None).
    attn_dtype: optional output dtype for the attention matrix (e.g. bf16 to
          halve the dominant attn-writeback HBM traffic); defaults to Q.dtype.
    Returns (context (B, H, Lq, Dv), attn (B, H, Lq, Lk)).
    """
    B, H, Lq, D = Q.shape
    Lk = K.shape[2]
    Dv = V.shape[3]
    BH = B * H
    attn_dt = jnp.dtype(attn_dtype) if attn_dtype is not None else jnp.dtype(Q.dtype)

    q2 = Q.reshape(BH, Lq, D)
    k2 = K.reshape(BH, Lk, D)
    v2 = V.reshape(BH, Lk, Dv)

    has_mask = mask is not None
    mask_broadcast = False
    m_arr = None
    if has_mask:
        assert mask.ndim == 4 and mask.shape[0] == B and mask.shape[2] == Lq \
            and mask.shape[3] == Lk and mask.shape[1] in (1, H)
        if mask.shape[1] == 1 and H > 1:
            # Head-broadcast mask: keep it (B, Lq, Lk); do NOT materialize BH copies.
            mask_broadcast = True
            m_arr = mask.reshape(B, Lq, Lk)
        else:
            m_arr = mask.reshape(BH, Lq, Lk)

    vmem_limit, step_budget = _vmem_budget()
    G, tq = _choose_tiles(
        BH, H, Lq, Lk, D, Dv,
        jnp.dtype(Q.dtype).itemsize, attn_dt.itemsize,
        (m_arr.dtype.itemsize if has_mask else 0),
        has_mask, mask_broadcast, step_budget)
    grid = (BH // G, Lq // tq)

    in_specs = [
        pl.BlockSpec((G, tq, D), lambda g, qi: (g, qi, 0)),
        # K/V block index is constant across qi -> not re-DMA'd per query tile.
        pl.BlockSpec((G, Lk, D), lambda g, qi: (g, 0, 0)),
        pl.BlockSpec((G, Lk, Dv), lambda g, qi: (g, 0, 0)),
    ]
    operands = [q2, k2, v2]
    if has_mask:
        if mask_broadcast:
            groups_per_batch = H // G    # integer by construction in _choose_tiles
            in_specs.append(pl.BlockSpec(
                (1, tq, Lk), lambda g, qi: (g // groups_per_batch, qi, 0)))
        else:
            in_specs.append(pl.BlockSpec((G, tq, Lk), lambda g, qi: (g, qi, 0)))
        operands.append(m_arr)

    kernel = functools.partial(
        _sdpa_kernel,
        scale=float(scale) if scale else 0.0,
        has_mask=has_mask,
    )

    ctx2, attn2 = pl.pallas_call(
        kernel,
        out_shape=(
            jax.ShapeDtypeStruct((BH, Lq, Dv), Q.dtype),
            jax.ShapeDtypeStruct((BH, Lq, Lk), attn_dt),
        ),
        grid_spec=pltpu.PrefetchScalarGridSpec(
            num_scalar_prefetch=0,
            grid=grid,
            in_specs=in_specs,
            out_specs=[
                pl.BlockSpec((G, tq, Dv), lambda g, qi: (g, qi, 0)),
                pl.BlockSpec((G, tq, Lk), lambda g, qi: (g, qi, 0)),
            ],
        ),
        compiler_params=pltpu.CompilerParams(
            dimension_semantics=("parallel", "parallel"),
            vmem_limit_bytes=int(vmem_limit),
        ),
    )(*operands)

    return ctx2.reshape(B, H, Lq, Dv), attn2.reshape(B, H, Lq, Lk)


def _reference(Q, K, V, scale, mask):
    scores = jnp.einsum("bhqd,bhkd->bhqk", Q, K)
    if scale:
        scores = scores * scale
    if mask is not None:
        scores = scores * (1.0 - mask) + mask * (-1000000.0)
    attn = jax.nn.softmax(scores, axis=-1)
    context = jnp.einsum("bhqk,bhkd->bhqd", attn, V)
    return context, attn


if __name__ == "__main__":
    B, H, Lq, Lk, D = 2, 2, 8, 8, 32

    key = jax.random.PRNGKey(0)
    kq, kk, kv, km = jax.random.split(key, 4)

    Q = jax.random.normal(kq, (B, H, Lq, D), dtype=jnp.float32)
    K = jax.random.normal(kk, (B, H, Lk, D), dtype=jnp.float32)
    V = jax.random.normal(kv, (B, H, Lk, D), dtype=jnp.float32)
    # binary mask: 1.0 = masked position, 0.0 = attend
    mask = (jax.random.uniform(km, (B, H, Lq, Lk)) < 0.2).astype(jnp.float32)
    mask_b = mask[:, :1]                 # head-broadcast (B, 1, Lq, Lk) mask
    scale = 1.0 / (D ** 0.5)

    # Full per-head mask
    context, attn = scaled_dot_product_attention(Q, K, V, scale, mask)
    # Head-broadcast mask (deduplicated mask DMA path)
    context_b, attn_b = scaled_dot_product_attention(Q, K, V, scale, mask_b)
    # No mask (mask DMA / arithmetic compiled out)
    context_nm, attn_nm = scaled_dot_product_attention(Q, K, V, scale, None)
    jax.block_until_ready((context, attn, context_b, attn_b, context_nm, attn_nm))

    ctx_ref, attn_ref = _reference(Q, K, V, scale, mask)
    ctx_ref_b, attn_ref_b = _reference(Q, K, V, scale, mask_b)
    ctx_ref_nm, attn_ref_nm = _reference(Q, K, V, scale, None)

    # Exact softmax reciprocal -> tolerances tightened vs previous (approx) version;
    # remaining differences are f32 matmul accumulation-order only.
    assert jnp.allclose(context, ctx_ref, atol=1e-4, rtol=1e-4)
    assert jnp.allclose(attn, attn_ref, atol=1e-4, rtol=1e-4)
    assert jnp.allclose(context_b, ctx_ref_b, atol=1e-4, rtol=1e-4)
    assert jnp.allclose(attn_b, attn_ref_b, atol=1e-4, rtol=1e-4)
    assert jnp.allclose(context_nm, ctx_ref_nm, atol=1e-4, rtol=1e-4)
    assert jnp.allclose(attn_nm, attn_ref_nm, atol=1e-4, rtol=1e-4)

    print("KERNEL_OK")
</pallas_src>

<mosaic_0001>
module attributes {stable_mosaic.version = 11 : i64} {
  func.func @_sdpa_kernel(%arg0: i32, %arg1: i32, %arg2: memref<2x8x32xf32, #tpu.memory_space<vmem>>, %arg3: memref<2x8x32xf32, #tpu.memory_space<vmem>>, %arg4: memref<2x8x32xf32, #tpu.memory_space<vmem>>, %arg5: memref<2x8x8xf32, #tpu.memory_space<vmem>>, %arg6: memref<2x8x32xf32, #tpu.memory_space<vmem>>, %arg7: memref<2x8x8xf32, #tpu.memory_space<vmem>>) attributes {dimension_semantics = [#tpu.dimension_semantics<parallel>, #tpu.dimension_semantics<parallel>], iteration_bounds = array<i64: 2, 1>, scalar_prefetch = 0 : i64, scratch_operands = 0 : i64, tpu.core_type = #tpu.core_type<tc>, window_params = [{transform_indices = @transform_0, window_bounds = array<i64: 2, 8, 32>}, {transform_indices = @transform_1, window_bounds = array<i64: 2, 8, 32>}, {transform_indices = @transform_2, window_bounds = array<i64: 2, 8, 32>}, {transform_indices = @transform_3, window_bounds = array<i64: 2, 8, 8>}, {transform_indices = @transform_4, window_bounds = array<i64: 2, 8, 32>}, {transform_indices = @transform_5, window_bounds = array<i64: 2, 8, 8>}]} {
    %c0 = arith.constant 0 : index
    %c0_0 = arith.constant 0 : index
    %c0_1 = arith.constant 0 : index
    %0 = vector.load %arg2[%c0, %c0_0, %c0_1] : memref<2x8x32xf32, #tpu.memory_space<vmem>>, vector<2x8x32xf32>
    %c0_2 = arith.constant 0 : index
    %c0_3 = arith.constant 0 : index
    %c0_4 = arith.constant 0 : index
    %1 = vector.load %arg3[%c0_2, %c0_3, %c0_4] : memref<2x8x32xf32, #tpu.memory_space<vmem>>, vector<2x8x32xf32>
    %c0_5 = arith.constant 0 : index
    %c0_6 = arith.constant 0 : index
    %c0_7 = arith.constant 0 : index
    %2 = vector.load %arg4[%c0_5, %c0_6, %c0_7] : memref<2x8x32xf32, #tpu.memory_space<vmem>>, vector<2x8x32xf32>
    %cst = arith.constant 0.176776692 : f32
    %3 = vector.broadcast %cst : f32 to vector<2x8x32xf32>
    %4 = arith.mulf %0, %3 : vector<2x8x32xf32>
    %cst_8 = arith.constant dense<0.000000e+00> : vector<2x8x8xf32>
    %5 = tpu.matmul %4, %1, %cst_8 {dimension_numbers = #tpu.dot_dimension_numbers<[2], [2], [1], [1], [0, 0, 0, 1, 1, 1], [0], [0]>} : vector<2x8x32xf32>, vector<2x8x32xf32>, vector<2x8x8xf32> -> vector<2x8x8xf32>
    %c0_9 = arith.constant 0 : index
    %c0_10 = arith.constant 0 : index
    %c0_11 = arith.constant 0 : index
    %6 = vector.load %arg5[%c0_9, %c0_10, %c0_11] : memref<2x8x8xf32, #tpu.memory_space<vmem>>, vector<2x8x8xf32>
    %cst_12 = arith.constant 1.000000e+00 : f32
    %7 = vector.broadcast %cst_12 : f32 to vector<2x8x8xf32>
    %8 = arith.subf %7, %6 : vector<2x8x8xf32>
    %9 = arith.mulf %5, %8 : vector<2x8x8xf32>
    %cst_13 = arith.constant -1.000000e+06 : f32
    %10 = vector.broadcast %cst_13 : f32 to vector<2x8x8xf32>
    %11 = arith.mulf %6, %10 : vector<2x8x8xf32>
    %12 = arith.addf %9, %11 : vector<2x8x8xf32>
    %cst_14 = arith.constant dense<0xFF800000> : vector<2x8xf32>
    %13 = vector.multi_reduction <maximumf>, %12, %cst_14 [2] : vector<2x8x8xf32> to vector<2x8xf32>
    %14 = vector.shape_cast %13 : vector<2x8xf32> to vector<2x8x1xf32>
    %15 = vector.broadcast %14 : vector<2x8x1xf32> to vector<2x8x8xf32>
    %16 = arith.subf %12, %15 : vector<2x8x8xf32>
    %17 = math.exp %16 : vector<2x8x8xf32>
    %cst_15 = arith.constant dense<0.000000e+00> : vector<2x8xf32>
    %18 = vector.multi_reduction <add>, %17, %cst_15 [2] : vector<2x8x8xf32> to vector<2x8xf32>
    %19 = vector.shape_cast %18 : vector<2x8xf32> to vector<2x8x1xf32>
    %cst_16 = arith.constant 1.000000e+00 : f32
    %20 = vector.broadcast %cst_16 : f32 to vector<2x8x1xf32>
    %21 = arith.divf %20, %19 : vector<2x8x1xf32>
    %22 = vector.broadcast %21 : vector<2x8x1xf32> to vector<2x8x8xf32>
    %23 = arith.mulf %17, %22 : vector<2x8x8xf32>
    %cst_17 = arith.constant dense<0.000000e+00> : vector<2x8x32xf32>
    %24 = tpu.matmul %23, %2, %cst_17 {dimension_numbers = #tpu.dot_dimension_numbers<[2], [1], [1], [2], [0, 0, 0, 1, 1, 2], [0], [0]>} : vector<2x8x8xf32>, vector<2x8x32xf32>, vector<2x8x32xf32> -> vector<2x8x32xf32>
    %c0_18 = arith.constant 0 : index
    %c0_19 = arith.constant 0 : index
    %c0_20 = arith.constant 0 : index
    %25 = vector.load %arg7[%c0_18, %c0_19, %c0_20] : memref<2x8x8xf32, #tpu.memory_space<vmem>>, vector<2x8x8xf32>
    tpu.vector_store %arg7[%c0_18, %c0_19, %c0_20], %23 {strides = array<i32>} : memref<2x8x8xf32, #tpu.memory_space<vmem>>, vector<2x8x8xf32>,
    %c0_21 = arith.constant 0 : index
    %c0_22 = arith.constant 0 : index
    %c0_23 = arith.constant 0 : index
    %26 = vector.load %arg6[%c0_21, %c0_22, %c0_23] : memref<2x8x32xf32, #tpu.memory_space<vmem>>, vector<2x8x32xf32>
    tpu.vector_store %arg6[%c0_21, %c0_22, %c0_23], %24 {strides = array<i32>} : memref<2x8x32xf32, #tpu.memory_space<vmem>>, vector<2x8x32xf32>,
    return
  }
  func.func @transform_0(%arg0: i32, %arg1: i32) -> (i32, i32, i32) {
    %c0_i32 = arith.constant 0 : i32
    %c0_i32_0 = arith.constant 0 : i32
    return %arg0, %arg1, %c0_i32 : i32, i32, i32
  }
  func.func @transform_1(%arg0: i32, %arg1: i32) -> (i32, i32, i32) {
    %c0_i32 = arith.constant 0 : i32
    %c0_i32_0 = arith.constant 0 : i32
    %c0_i32_1 = arith.constant 0 : i32
    return %arg0, %c0_i32, %c0_i32_0 : i32, i32, i32
  }
  func.func @transform_2(%arg0: i32, %arg1: i32) -> (i32, i32, i32) {
    %c0_i32 = arith.constant 0 : i32
    %c0_i32_0 = arith.constant 0 : i32
    %c0_i32_1 = arith.constant 0 : i32
    return %arg0, %c0_i32, %c0_i32_0 : i32, i32, i32
  }
  func.func @transform_3(%arg0: i32, %arg1: i32) -> (i32, i32, i32) {
    %c0_i32 = arith.constant 0 : i32
    %c0_i32_0 = arith.constant 0 : i32
    return %arg0, %arg1, %c0_i32 : i32, i32, i32
  }
  func.func @transform_4(%arg0: i32, %arg1: i32) -> (i32, i32, i32) {
    %c0_i32 = arith.constant 0 : i32
    %c0_i32_0 = arith.constant 0 : i32
    return %arg0, %arg1, %c0_i32 : i32, i32, i32
  }
  func.func @transform_5(%arg0: i32, %arg1: i32) -> (i32, i32, i32) {
    %c0_i32 = arith.constant 0 : i32
    %c0_i32_0 = arith.constant 0 : i32
    return %arg0, %arg1, %c0_i32 : i32, i32, i32
  }
}

</mosaic_0001>

<bundles_post_ra>
// kernel: tpu_custom_call.1
= control target key start
LH: loop header
LB: loop body
LE: loop exit
PB: predicated region body
PF: predicated region fallthrough
CT: control target
= control target key end

     0   :  { %s1712_s0 = inlined_call_operand.hbm [shape: f32[4,8,32], index: 0, kind: input, shape index: {}]   ;;  %s1713_s1 = inlined_call_operand.hbm [shape: f32[4,8,32], index: 1, kind: input, shape index: {}]   ;;  %s1714_s2 = inlined_call_operand.hbm [shape: f32[4,8,32], index: 2, kind: input, shape index: {}]   ;;  %s1715_s3 = inlined_call_operand.hbm [shape: f32[4,8,8], index: 3, kind: input, shape index: {}]   ;;  %s1716_s4 = inlined_call_operand.hbm [shape: f32[4,8,32], index: 4, kind: output, shape index: {0}]   ;;  %s1717_s5 = inlined_call_operand.hbm [shape: f32[4,8,8], index: 5, kind: output, shape index: {1}]  }
   0x1   :  { %1725 = sst [smem:[#allocation24_spill]] %s1713_s1 }
   0x2   :  { %11 = vsyncpa [#allocation3], 0 }
   0x3   :  { %13 = vsyncpa [#allocation3 + $0x1], 0 }
   0x4   :  { %14 = vsyncpa [#allocation6], 0 }
   0x5   :  { %16 = vsyncpa [#allocation6 + $0x1], 0 }
   0x6   :  { %17 = vsyncpa [#allocation9], 0 }
   0x7   :  { %19 = vsyncpa [#allocation9 + $0x1], 0 }
   0x8   :  { %20 = vsyncpa [#allocation4], 0 }
   0x9   :  { %22 = vsyncpa [#allocation4 + $0x1], 0 }
   0xa   :  { %23 = vsyncpa [#allocation12], 0 }
   0xb   :  { %25 = vsyncpa [#allocation12 + $0x1], 0  ;;  %s1410_s18 = smov 0   ;;  %s1412_s19 = smov 0  }
   0xc   :  { %s1414_s20 = smov 0   ;;  %s1416_s21 = smov 0  }
   0xd   :  { %s1418_s22 = smov 0   ;;  %s1420_s23 = smov 0  }
   0xe LB: > { %1726 = sst [smem:[#allocation18_spill]] %s1346_s18  ;;  %s1441_s24 = sadd.s32 4294967295, %s1366_s23   ;;  %s1366_s23 = sphi %s1420_s23, %s31_s23   ;;  %s1362_s22 = sphi %s1418_s22, %s1746_s22   ;;  %s1358_s21 = sphi %s1416_s21, %s1745_s21   ;;  %s1354_s20 = sphi %s1414_s20, %s1744_s20   ;;  %s1350_s19 = sphi %s1412_s19, %s1748_s19   ;;  %s1346_s18 = sphi %s1410_s18, %s1747_s18  }
   0xf   : > { %1727 = sst [smem:[#allocation19_spill]] %s1354_s20  ;;  %s970_s25 = sadd.s32 4294967294, %s1366_s23  }
  0x10   : > { %1728 = sst [smem:[#allocation20_spill]] %s1362_s22  ;;  %s43_s26 = sadd.s32 1, %s1362_s22 }
  0x11   : > { %s52_s27 = sadd.s32 1, %s1354_s20  ;;  %p45_p0 = scmp.ge.s32.totalorder %s43_s26, 2 }
  0x12   : > { %p59_p1 = scmp.ne.s32.totalorder %s1354_s20, %s1350_s19  ;;  %p60_p2 = scmp.eq.s32.totalorder %s1366_s23, 0 }
  0x13   : > { %p65_p3 = scmp.ne.s32.totalorder %s1350_s19, %s1346_s18  ;;  %s1750_s26 = smov (%p45_p0, %s43_s26), 0 }
  0x14   : > { %1729 = sst [smem:[#allocation21_spill]] %s1750_s26  ;;  %p1453_p4 = por %p60_p2, %p59_p1 }
  0x15   : > { %p66_p5 = scmp.eq.s32.totalorder %s1441_s24, 0  ;;  %s47_s29 = ssub.s32 %s1362_s22, %s1750_s26 }
  0x16   : > { %p171_p6 = scmp.eq.s32.totalorder %s1441_s24, 1  ;;  %p50_p7 = scmp.eq.s32.totalorder %s47_s29, 0 }
  0x17   : > { %p1461_p8 = por %p66_p5, %p65_p3  ;;  %p177_p10 = scmp.eq.s32.totalorder %s970_s25, 1 }
  0x18   : > { %p1465_p9 = por %p171_p6, %p59_p1  ;;  %p1072_p13 = scmp.lt.s32.totalorder %s1366_s23, 2 }
  0x19   : > { %s1470_s7 = scalar_select %p50_p7, %s1354_s20, %s52_s27  }
  0x1a   : > { %p1472_p11 = por %p177_p10, %p65_p3  ;;  %s1479_s9 = sand.u32 1, %s1354_s20  }
  0x1b   : > { %1733 = sst [smem:[#allocation22_spill]] %s1470_s7  ;;  %s1482_s10 = sshll.u32 %s1479_s9, 4 }
  0x1c   : > { %s1734_s8 = scalar_select %p1472_p11, 1, 0 }
  0x1d   : > { %s1485_s11 = sshll.u32 %s1362_s22, 8  ;;  %p1489_p0 = pnand %p1072_p13, %p1453_p4 }
  0x1e   : > { %1735 = sst [smem:[#allocation23_spill]] %s1734_s8  ;;  %s247_s13 = sand.u32 1, %s1366_s23  }
  0x1f   : > { %s1737_s1 = sld [smem:[#allocation24_spill]]  ;;  %s251_s17 = scalar_lea.vmem [#allocation5], %s1482_s10 }
  0x20   : > { %s258_s25 = sshll.u32 %s251_s17, 4  ;;  %p985_p1 = scmp.ge.s32.totalorder %s1366_s23, 1  ;;  %s259_s25 = int_to_ptr.vmem [resolvable:$true] %s258_s25 }
  0x21   : > { %p309_p2 = scmp.lt.s32.totalorder %s1366_s23, 3  ;;  %s1501_s27 = scalar_lea.sflag [#allocation6], %s247_s13 }
  0x22   : > { %p1138_p3 = pneg %p1489_p0  ;;  %s1149_s28 = scalar_lea.vmem %s259_s25, 256 }
  0x23   : > { %p1150_p4 = scmp.ne.s32.totalorder %s259_s25, %s1149_s28  ;;  %s1368_s29 = smov [#allocation5]  }
  0x24   : > { %s1154_s26 = sshll.u32 %s1368_s29, 4  ;;  %s1155_s26 = int_to_ptr.vmem [resolvable:$false] %s1154_s26 }
  0x25   : > { %s257_s16 = scalar_lea.hbm %s1737_s1, %s1485_s11  ;;  %p1152_p5 = pnand %p1150_p4, %p1138_p3 }
  0x26   : > { %s1156_s14 = scalar_lea.vmem %s1155_s26, 512  ;;  %p1157_p7 = scmp.lt.s32.totalorder %s259_s25, %s1155_s26 }
  0x27   : > { %p1153_p6 = pneg %p1152_p5  ;;  %p1158_p10 = scmp.lt.s32.totalorder %s1156_s14, %s1149_s28 }
  0x29   : > { %p1159_p13 = por %p1158_p10, %p1157_p7 }
  0x2b   : > { %p1160_p12 = pnand %p1159_p13, %p1153_p6 }
  0x2d   : > { %1163 = shalt.err (!%p1160_p12)
}
  0x2e   : > { %s1723_s15 = smov 128   ;;  %s1370_s13 = smov 8  }
  0x2f   : > { %1058 = dma.hbm_to_vmem [thread:$0]  (!%p1489_p0), %s257_s16, 256, %s259_s25, %s1501_s27, %s1723_s15, %s1723_s15, %s1370_s13  }
  0x30   : > { %p1518_p4 = pnand %p985_p1, %p309_p2  ;;  %s236_s29 = scalar_lea.hbm %s1712_s0, %s1485_s11 }
  0x31   : > { %s229_s14 = scalar_lea.vmem [#allocation2], %s1482_s10  ;;  %s278_s20 = scalar_lea.hbm %s1714_s2, %s1485_s11 }
  0x32   : > { %s237_s1 = sshll.u32 %s229_s14, 4  ;;  %s226_s8 = scalar_lea.sflag [#allocation3], %s1479_s9  ;;  %s238_s1 = int_to_ptr.vmem [resolvable:$true] %s237_s1 }
  0x33   : > { %s1177_s18 = scalar_lea.vmem %s238_s1, 256  ;;  %s1371_s16 = smov [#allocation2]  }
  0x34   : > { %p1178_p12 = scmp.ne.s32.totalorder %s238_s1, %s1177_s18  ;;  %s1182_s25 = sshll.u32 %s1371_s16, 4  ;;  %s1183_s25 = int_to_ptr.vmem [resolvable:$false] %s1182_s25 }
  0x35   : > { %s1184_s15 = scalar_lea.vmem %s1183_s25, 512  ;;  %p1185_p5 = scmp.lt.s32.totalorder %s238_s1, %s1183_s25 }
  0x36   : > { %p1180_p1 = pnand %p1178_p12, %p1138_p3  ;;  %p1186_p6 = scmp.lt.s32.totalorder %s1184_s15, %s1177_s18 }
  0x38   : > { %p1181_p2 = pneg %p1180_p1  ;;  %p1187_p7 = por %p1186_p6, %p1185_p5 }
  0x3a   : > { %p1188_p10 = pnand %p1187_p7, %p1181_p2 }
  0x3c   : > { %1191 = shalt.err (!%p1188_p10)
}
  0x3d   : > { %s1739_s22 = smov 128   ;;  %s272_s7 = scalar_lea.vmem [#allocation7], %s1482_s10 }
  0x3e   : > { %1055 = dma.hbm_to_vmem [thread:$0]  (!%p1489_p0), %s236_s29, 256, %s238_s1, %s226_s8, %s1739_s22, %s1739_s22, %s1370_s13  }
  0x3f   : > { %s279_s17 = sshll.u32 %s272_s7, 4  ;;  %s1372_s18 = smov [#allocation7]   ;;  %s280_s17 = int_to_ptr.vmem [resolvable:$true] %s279_s17 }
  0x40   : > { %s1205_s28 = scalar_lea.vmem %s280_s17, 256  ;;  %s1210_s15 = sshll.u32 %s1372_s18, 4  ;;  %s1211_s15 = int_to_ptr.vmem [resolvable:$false] %s1210_s15 }
  0x41   : > { %p1206_p13 = scmp.ne.s32.totalorder %s280_s17, %s1205_s28  ;;  %s1212_s14 = scalar_lea.vmem %s1211_s15, 512 }
  0x42   : > { %p1213_p2 = scmp.lt.s32.totalorder %s280_s17, %s1211_s15  ;;  %p1214_p5 = scmp.lt.s32.totalorder %s1212_s14, %s1205_s28 }
  0x43   : > { %p1208_p12 = pnand %p1206_p13, %p1138_p3 }
  0x44   : > { %p1215_p6 = por %p1214_p5, %p1213_p2 }
  0x45   : > { %p1209_p1 = pneg %p1208_p12 }
  0x47   : > { %p1216_p7 = pnand %p1215_p6, %p1209_p1 }
  0x49   : > { %1219 = shalt.err (!%p1216_p7)
}
  0x4a   : > { %1061 = dma.hbm_to_vmem [thread:$0]  (!%p1489_p0), %s278_s20, 256, %s280_s17, %s1501_s27, %s1739_s22, %s1739_s22, %s1370_s13  }
  0x4b   : > { %s300_s25 = scalar_lea.hbm %s1715_s3, %s1485_s11  ;;  %s293_s7 = scalar_lea.vmem [#allocation8], %s1482_s10 }
  0x4c   : > { %s301_s28 = sshll.u32 %s293_s7, 4  ;;  %s290_s18 = scalar_lea.sflag [#allocation9], %s1479_s9  ;;  %s302_s28 = int_to_ptr.vmem [resolvable:$true] %s301_s28 }
  0x4d   : > { %s1233_s15 = scalar_lea.vmem %s302_s28, 256  ;;  %s1373_s14 = smov [#allocation8]  }
  0x4e   : > { %p1234_p10 = scmp.ne.s32.totalorder %s302_s28, %s1233_s15  ;;  %s1238_s1 = sshll.u32 %s1373_s14, 4  ;;  %s1239_s1 = int_to_ptr.vmem [resolvable:$false] %s1238_s1 }
  0x4f   : > { %s1240_s8 = scalar_lea.vmem %s1239_s1, 512  ;;  %p1241_p1 = scmp.lt.s32.totalorder %s302_s28, %s1239_s1 }
  0x50   : > { %p1236_p13 = pnand %p1234_p10, %p1138_p3  ;;  %p1242_p2 = scmp.lt.s32.totalorder %s1240_s8, %s1233_s15 }
  0x52   : > { %p1237_p12 = pneg %p1236_p13  ;;  %p1243_p5 = por %p1242_p2, %p1241_p1 }
  0x54   : > { %p1244_p6 = pnand %p1243_p5, %p1237_p12 }
  0x56   : > { %1247 = shalt.err (!%p1244_p6)
}
  0x57   : > { %1064 = dma.hbm_to_vmem [thread:$0]  (!%p1489_p0), %s300_s25, 256, %s302_s28, %s290_s18, %s1739_s22, %s1739_s22, %s1370_s13  }
  0x58   : > { %313 = sbr.rel (%p1518_p4) target bundleno = 826 (0x33a), region = 36  ;;  %s1572_s20 = sand.u32 (!%p1518_p4), 1, %s1350_s19  }
  0x59   : > { %s1575_s9 = sshll.u32 (!%p1518_p4), %s1572_s20, 4  ;;  %s316_s10 = scalar_lea.sflag (!%p1518_p4), [#allocation3], %s1572_s20 }
  0x5a   : > { %s319_s11 = scalar_lea.vmem (!%p1518_p4), [#allocation2], %s1575_s9 }
  0x5d   : > { %1325 = dma.done.wait (%p1461_p8), %s316_s10, 256  }
  0x5e   : > { %1327 = vsyncadd (%p1461_p8), %s316_s10, 4294967040  ;;  %s324_s12 = sand.u32 1, %s1441_s24   ;;  %s328_s13 = scalar_lea.vmem [#allocation5], %s1575_s9 }
  0x5f   : > { %s325_s27 = scalar_lea.sflag [#allocation6], %s324_s12 }
  0x60   : > { %1329 = dma.done.wait (%p1461_p8), %s325_s27, 512  }
  0x61   : > { %1331 = vsyncadd (%p1461_p8), %s325_s27, 4294966784  ;;  %s337_s26 = scalar_lea.vmem [#allocation7], %s1575_s9  ;;  %s343_s22 = scalar_lea.sflag [#allocation9], %s1572_s20 }
  0x62   : > { %s346_s17 = scalar_lea.vmem [#allocation8], %s1575_s9 }
  0x63   : > { %1333 = dma.done.wait (%p1461_p8), %s343_s22, 256  }
  0x64   : > { %1335 = vsyncadd (%p1461_p8), %s343_s22, 4294967040  ;;  %v1374_v0 = vmov 0.0   ;;  %vm1375_vm0 = vmmov 0   ;;  %vm407_vm1 = vcmask 261120   ;;  %v401_v1 = vld [vmem:[%s328_s13] sm:$0xff]  ;;  %v402_v2 = vld [vmem:[%s328_s13 + $0x8] sm:$0xff] }
  0x65   : > { %1020 = vmatprep.subr.mxu0 %v1374_v0  ;;  %1025 = vmatprep.subr.mxu1 %v1374_v0  ;;  %v399_v3 = vld [vmem:[%s319_s11] sm:$0xff]  ;;  %v400_v5 = vld [vmem:[%s319_s11 + $0x8] sm:$0xff]  ;;  %vm570_vm2 = vcmask 64512   ;;  %s392_s24 = scalar_lea.vmem [#allocation11], %s1575_s9  ;;  %s1010_s30 = sshll.u32 %s1358_s21, 8 }
  0x66   : > { %1022 = vmatprep.mubr.msk.f32.mxu0 %vm1375_vm0, %v1374_v0  ;;  %1027 = vmatprep.mubr.msk.f32.mxu1 %vm1375_vm0, %v1374_v0  ;;  %v405_v4 = vmul.f32 0.17677669, %v399_v3  ;;  %v406_v6 = vmul.f32 0.17677669, %v400_v5  ;;  %v560_v7 = vld [vmem:[%s346_s17] sm:$0xff]  ;;  %v561_v8 = vld [vmem:[%s346_s17 + $0x8] sm:$0xff]  ;;  %s1623_s7 = scalar_lea.hbm %s1717_s5, %s1010_s30 }
  0x67   : > { %1021 = vmatpush3.xpose.msk.msra.mxu0 %vm407_vm1, %v401_v1  ;;  %1026 = vmatpush3.xpose.msk.msra.mxu1 %vm407_vm1, %v402_v2  ;;  %v562_v9 = vsub.f32 1.0, %v560_v7  ;;  %v563_v10 = vsub.f32 1.0, %v561_v8  ;;  %v566_v11 = vmul.f32 -1000000.0, %v560_v7  ;;  %v567_v12 = vmul.f32 -1000000.0, %v561_v8 }
  0x68   : > { %1030 = vmatprep.subr.mxu0 %v1374_v0  ;;  %1035 = vmatprep.subr.mxu1 %v1374_v0  ;;  %v403_v33 = vld [vmem:[%s337_s26] sm:$0xff]  ;;  %v404_v34 = vld [vmem:[%s337_s26 + $0x8] sm:$0xff]  ;;  %s782_s29 = sshll.u32 %s392_s24, 4  ;;  %s751_s28 = scalar_lea.sflag [#allocation12], %s1572_s20  ;;  %s1625_s29 = int_to_ptr.vmem [resolvable:$true] %s782_s29 }
  0x69   : > { %s1248_s18 = scalar_lea.vmem %s1625_s29, 256  ;;  %s1376_s15 = smov [#allocation11]  }
  0x6a   : > { %1023 = vmatmul.mubr.msk.f32.vlgmr.msra.gmra.mxu0 %vm407_vm1, %v405_v4  ;;  %1028 = vmatmul.mubr.msk.f32.vlgmr.msra.gmra.mxu1 %vm407_vm1, %v406_v6  ;;  %p1249_p8 = scmp.ne.s32.totalorder %s1625_s29, %s1248_s18  ;;  %s1252_s14 = sshll.u32 %s1376_s15, 4  ;;  %s1253_s14 = int_to_ptr.vmem [resolvable:$false] %s1252_s14 }
  0x6b   : > { %1032 = vmatprep.mubr.msk.f32.mxu0 %vm1375_vm0, %v1374_v0  ;;  %1037 = vmatprep.mubr.msk.f32.mxu1 %vm1375_vm0, %v1374_v0  ;;  %s1254_s1 = scalar_lea.vmem %s1253_s14, 512  ;;  %p1255_p4 = scmp.lt.s32.totalorder %s1625_s29, %s1253_s14 }
  0x6c   : > { %1031 = vmatpush3.msra.mxu0 %v403_v33  ;;  %1036 = vmatpush3.msra.mxu1 %v404_v34  ;;  %p1250_p0 = pnand %p1249_p8, %p1465_p9  ;;  %p1256_p7 = scmp.lt.s32.totalorder %s1254_s1, %s1248_s18 }
  0x6e   : > { %p1251_p3 = pneg %p1250_p0  ;;  %p1257_p10 = por %p1256_p7, %p1255_p4 }
  0x70   : > { %p1258_p13 = pnand %p1257_p10, %p1251_p3 }
 0x12a   : > { %v480_v13 = vpop.f32.mrf.mxu0  ;;  %v556_v14 = vpop.f32.mrf.mxu1 }
 0x12b   : > { %v564_v15 = vmul.f32 %v562_v9, %v480_v13  ;;  %v565_v16 = vmul.f32 %v563_v10, %v556_v14 }
 0x12c   : > { %v1024_v17 = vpop.f32.mrf.mxu0  ;;  %v1029_v18 = vpop.f32.mrf.mxu1 }
 0x12d   : > { %v568_v19 = vadd.f32 %v566_v11, %v564_v15  ;;  %v569_v20 = vadd.f32 %v567_v12, %v565_v16 }
 0x12f   : > { %v571_v21 = vsel %vm570_vm2, %v568_v19, -inf  ;;  %v574_v22 = vsel %vm570_vm2, %v569_v20, -inf }
 0x130   : > { %572 = vmax.xlane.f32.xlu0 %v571_v21 }
 0x134   : > { %575 = vmax.xlane.f32.xlu0 %v574_v22 }
 0x1b9   : > { %v573_v23 = vpop.xlane.xlu0 %572 }
 0x1ba   : > { %v577_v24 = vsub.f32 %v568_v19, %v573_v23 }
 0x1bc   : > { %v579_v25 = vmul.f32 1.442695, %v577_v24 }
 0x1bd   : > { %v576_v26 = vpop.xlane.xlu0 %575 }
 0x1be   : > { %1128 = vpow2.f32 %v579_v25  ;;  %v578_v27 = vsub.f32 %v569_v20, %v576_v26 }
 0x1c0   : > { %v581_v28 = vmul.f32 1.442695, %v578_v27 }
 0x1c2   : > { %1130 = vpow2.f32 %v581_v28 }
 0x1cb   : > { %v1129_v29 = vpop.eup %1128 }
 0x1cc   : > { %v583_v30 = vsel %vm570_vm2, %v1129_v29, 0.0 }
 0x1cd   : > { %584 = vadd.xlane.f32.xlu1 %v583_v30 }
 0x1cf   : > { %v1131_v31 = vpop.eup %1130 }
 0x1d0   : > { %v586_v32 = vsel %vm570_vm2, %v1131_v31, 0.0 }
 0x1d1   : > { %587 = vadd.xlane.f32.xlu1 %v586_v32 }
 0x256   : > { %v585_v35 = vpop.xlane.xlu1 %584 }
 0x257   : > { %1132 = vrcp.f32 %v585_v35 }
 0x25a   : > { %v588_v36 = vpop.xlane.xlu1 %587 }
 0x25b   : > { %1134 = vrcp.f32 %v588_v36 }
 0x264   : > { %v1133_v37 = vpop.eup %1132 }
 0x265   : > { %v593_v38 = vmul.f32 %v1133_v37, %v1129_v29 }
 0x267   : > { %1033 = vmatmul.mubr.msk.f32.vlgmr.msra.gmra.mxu0 %vm570_vm2, %v593_v38  ;;  %741 = vst.msk [vmem:[%s392_s24] sm:$0xff] %vm570_vm2, %v593_v38 }
 0x268   : > { %v1135_v39 = vpop.eup %1134 }
 0x269   : > { %v594_v40 = vmul.f32 %v1135_v39, %v1131_v31 }
 0x26b   : > { %1038 = vmatmul.mubr.msk.f32.vlgmr.msra.gmra.mxu1 %vm570_vm2, %v594_v40  ;;  %742 = vst.msk [vmem:[%s392_s24 + $0x8] sm:$0xff] %vm570_vm2, %v594_v40 }
 0x26c   : > { %1261 = shalt.err (!%p1258_p13)
}
 0x26d   : > { %s1262_s8 = scalar_lea.hbm %s1623_s7, 256  ;;  %s1266_s12 = scalar_lea.hbm %s1717_s5, 512 }
 0x26e   : > { %p1263_p12 = scmp.ne.s32.totalorder %s1623_s7, %s1262_s8  ;;  %p1267_p5 = scmp.lt.s32.totalorder %s1623_s7, %s1717_s5 }
 0x26f   : > { %p1268_p6 = scmp.lt.s32.totalorder %s1266_s12, %s1262_s8 }
 0x270   : > { %p1264_p1 = pnand %p1263_p12, %p1465_p9 }
 0x271   : > { %p1269_p8 = por %p1268_p6, %p1267_p5 }
 0x272   : > { %p1265_p2 = pneg %p1264_p1 }
 0x274   : > { %p1270_p0 = pnand %p1269_p8, %p1265_p2 }
 0x276   : > { %1273 = shalt.err (!%p1270_p0)
}
 0x277   : > { %s1377_s26 = smov 128   ;;  %s1378_s22 = smov 8  }
 0x278   : > { %1049 = dma.vmem_to_hbm [thread:$0]  (%p1465_p9), %s1625_s29, 256, %s1623_s7, %s751_s28, %s1377_s26, %s1377_s26, %s1378_s22  }
 0x279   : > { %s385_s17 = scalar_lea.vmem [#allocation10], %s1575_s9  ;;  %s1662_s18 = scalar_lea.hbm %s1716_s4, %s1010_s30 }
 0x27a   : > { %s765_s24 = sshll.u32 %s385_s17, 4  ;;  %s746_s9 = scalar_lea.sflag [#allocation4], %s1572_s20  ;;  %s1655_s24 = int_to_ptr.vmem [resolvable:$true] %s765_s24 }
 0x27b   : > { %s1274_s29 = scalar_lea.vmem %s1655_s24, 256  ;;  %s1379_s7 = smov [#allocation10]  }
 0x27c   : > { %p1275_p3 = scmp.ne.s32.totalorder %s1655_s24, %s1274_s29  ;;  %s1278_s28 = sshll.u32 %s1379_s7, 4  ;;  %s1279_s28 = int_to_ptr.vmem [resolvable:$false] %s1278_s28 }
 0x27d   : > { %s1280_s15 = scalar_lea.vmem %s1279_s28, 512  ;;  %p1281_p10 = scmp.lt.s32.totalorder %s1655_s24, %s1279_s28 }
 0x27e   : > { %p1276_p4 = pnand %p1275_p3, %p1465_p9  ;;  %p1282_p13 = scmp.lt.s32.totalorder %s1280_s15, %s1274_s29 }
 0x280   : > { %p1277_p7 = pneg %p1276_p4  ;;  %p1283_p12 = por %p1282_p13, %p1281_p10 }
 0x282   : > { %p1284_p1 = pnand %p1283_p12, %p1277_p7 }
 0x327   : > { %v664_v41 = vpop.f32.mrf.mxu0 }
 0x328   : > { %743 = vst.msk [vmem:[%s385_s17] sm:$0xff] %vm407_vm1, %v664_v41 }
 0x329   : > { %v1034_v42 = vpop.f32.mrf.mxu0 }
 0x32b   : > { %v737_v43 = vpop.f32.mrf.mxu1 }
 0x32c   : > { %744 = vst.msk [vmem:[%s385_s17 + $0x8] sm:$0xff] %vm407_vm1, %v737_v43 }
 0x32d   : > { %v1039_v44 = vpop.f32.mrf.mxu1 }
 0x32e   : > { %1287 = shalt.err (!%p1284_p1)
}
 0x32f   : > { %s1288_s21 = scalar_lea.hbm %s1662_s18, 256  ;;  %s1292_s14 = scalar_lea.hbm %s1716_s4, 512 }
 0x330   : > { %p1289_p2 = scmp.ne.s32.totalorder %s1662_s18, %s1288_s21  ;;  %p1293_p8 = scmp.lt.s32.totalorder %s1662_s18, %s1716_s4 }
 0x331   : > { %p1294_p0 = scmp.lt.s32.totalorder %s1292_s14, %s1288_s21 }
 0x332   : > { %p1290_p5 = pnand %p1289_p2, %p1465_p9 }
 0x333   : > { %p1295_p3 = por %p1294_p0, %p1293_p8 }
 0x334   : > { %p1291_p6 = pneg %p1290_p5 }
 0x336   : > { %p1296_p4 = pnand %p1295_p3, %p1291_p6 }
 0x338   : > { %1299 = shalt.err (!%p1296_p4)
}
 0x339   : > { %1048 = dma.vmem_to_hbm [thread:$0]  (%p1465_p9), %s1655_s24, 256, %s1662_s18, %s746_s9, %s1377_s26, %s1377_s26, %s1378_s22  }
 0x33a PF: > { %s1740_s10 = sld [smem:[#allocation18_spill]]  ;;  %p1742_p7 = scmp.ge.s32.totalorder %s1366_s23, 2 }
 0x33c   : > { %p1066_p10 = pnand %p1742_p7, %p1472_p11 }
 0x33e   : > { %p1067_p13 = pneg %p1066_p10 }
 0x340   : > { %s797_s12 = sand.u32 1, %s1740_s10  }
 0x341   : > { %s798_s27 = scalar_lea.sflag [#allocation4], %s797_s12 }
 0x342   : > { %1337 = dma.done.wait (%p1067_p13), %s798_s27, 256  }
 0x343   : > { %1339 = vsyncadd (%p1067_p13), %s798_s27, 4294967040  ;;  %s807_s13 = scalar_lea.sflag [#allocation12], %s797_s12 }
 0x344   : > { %1341 = dma.done.wait (%p1067_p13), %s807_s13, 256  }
 0x345   : > { %1343 = vsyncadd (%p1067_p13), %s807_s13, 4294967040  ;;  %s31_s23 = sadd.s32 1, %s1366_s23   ;;  %s1743_s6 = sld [smem:[#allocation19_spill]] }
 0x346   : > { %p28_p12 = scmp.ge.s32.totalorder %s31_s23, 4   ;;  %s1744_s20 = sld [smem:[#allocation22_spill]] }
 0x347   : > { %s1745_s21 = sld [smem:[#allocation20_spill]]  ;;  %s1747_s18 = smov %s1350_s19 }
 0x348   : > { %s1746_s22 = sld [smem:[#allocation21_spill]]  ;;  %30 = sbr.rel (!%p28_p12) target bundleno = 14 (0xe), region = 135 }
 0x34b   : > { %s1748_s19 = smov %s1743_s6 }
 0x34d   :  { %812 = vsyncpa [#allocation3], 1 }
 0x34e   :  { %814 = vsyncpa [#allocation3 + $0x1], 1 }
 0x34f   :  { %815 = vsyncpa [#allocation6], 1 }
 0x350   :  { %817 = vsyncpa [#allocation6 + $0x1], 1 }
 0x351   :  { %818 = vsyncpa [#allocation9], 1 }
 0x352   :  { %820 = vsyncpa [#allocation9 + $0x1], 1 }
 0x353   :  { %821 = vsyncpa [#allocation4], 1 }
 0x354   :  { %823 = vsyncpa [#allocation4 + $0x1], 1 }
 0x355   :  { %824 = vsyncpa [#allocation12], 1 }
 0x356   :  { %826 = vsyncpa [#allocation12 + $0x1], 1 }

</bundles_post_ra>
